<compile_context>
chip_gen: v7x
topology: tpu7x:2x2x1
jax: 0.10.0
libtpu: 0.0.40
codegen_flags: <defaults>
</compile_context>

<pallas_src>
import functools
import math

import jax
import jax.numpy as jnp
from jax.experimental import pallas as pl
from jax.experimental.pallas import tpu as pltpu


def _round_up(x, m):
    return ((x + m - 1) // m) * m


def _dqn_kernel(x_ref, w1_ref, b1_ref, w2_ref, b2_ref, w3_ref, b3_ref, out_ref):
    x = x_ref[...]
    # fc1 + ReLU
    h1 = jnp.dot(x, w1_ref[...], preferred_element_type=jnp.float32) + b1_ref[...]
    h1 = jnp.maximum(h1, 0.0)
    # fc2 + ReLU
    h2 = jnp.dot(h1, w2_ref[...], preferred_element_type=jnp.float32) + b2_ref[...]
    h2 = jnp.maximum(h2, 0.0)
    # fc3 (Q-values), lane-dense padded output
    q = jnp.dot(h2, w3_ref[...], preferred_element_type=jnp.float32) + b3_ref[...]
    out_ref[...] = q.astype(out_ref.dtype)


@functools.partial(jax.jit, static_argnames=("action_dim", "block_b"))
def dqn_forward(state, packed, *, action_dim, block_b=128):
    """Pallas DQN forward. state: [B, state_size] f32. Returns [B, action_dim]."""
    B, S = state.shape
    Hp = packed["w1"].shape[1]   # hidden, padded to 128 multiple
    Ap = packed["w3"].shape[1]   # action dim, padded to 128 multiple

    # Batch tile: at least 8 sublanes (f32), at most block_b rows per step.
    tb = min(block_b, _round_up(max(B, 1), 8))
    Bp = _round_up(B, tb)
    if Bp != B:
        state = jnp.pad(state, ((0, Bp - B), (0, 0)))

    grid = (Bp // tb,)

    flops = 2 * Bp * (S * Hp + Hp * Hp + Hp * Ap)
    bytes_accessed = 4 * (Bp * S                       # state in
                          + S * Hp + Hp                # fc1
                          + Hp * Hp + Hp               # fc2
                          + Hp * Ap + Ap               # fc3
                          + Bp * Ap)                   # output

    out_padded = pl.pallas_call(
        _dqn_kernel,
        out_shape=jax.ShapeDtypeStruct((Bp, Ap), jnp.float32),
        grid=grid,
        in_specs=[
            pl.BlockSpec((tb, S), lambda i: (i, 0)),     # state tile (streamed)
            pl.BlockSpec((S, Hp), lambda i: (0, 0)),     # weights stay resident
            pl.BlockSpec((1, Hp), lambda i: (0, 0)),
            pl.BlockSpec((Hp, Hp), lambda i: (0, 0)),
            pl.BlockSpec((1, Hp), lambda i: (0, 0)),
            pl.BlockSpec((Hp, Ap), lambda i: (0, 0)),
            pl.BlockSpec((1, Ap), lambda i: (0, 0)),
        ],
        out_specs=pl.BlockSpec((tb, Ap), lambda i: (i, 0)),
        compiler_params=pltpu.CompilerParams(
            dimension_semantics=("parallel",)),
        cost_estimate=pl.CostEstimate(
            flops=flops, transcendentals=0, bytes_accessed=bytes_accessed),
    )(state,
      packed["w1"], packed["b1"],
      packed["w2"], packed["b2"],
      packed["w3"], packed["b3"])

    return out_padded[:B, :action_dim]


# ---------------------------------------------------------------------------
# Parameter construction (PyTorch nn.Linear-style init), logical shapes.
# ---------------------------------------------------------------------------
def _linear_init(key, fan_in, fan_out):
    # PyTorch nn.Linear default: W, b ~ U(-1/sqrt(fan_in), 1/sqrt(fan_in)).
    kw, kb = jax.random.split(key)
    bound = 1.0 / math.sqrt(fan_in)
    w = jax.random.uniform(kw, (fan_in, fan_out), jnp.float32, -bound, bound)
    b = jax.random.uniform(kb, (1, fan_out), jnp.float32, -bound, bound)
    return w, b


def init_params(key, state_size, action_size, hidden_size):
    k1, k2, k3 = jax.random.split(key, 3)
    w1, b1 = _linear_init(k1, state_size, hidden_size)
    w2, b2 = _linear_init(k2, hidden_size, hidden_size)
    w3, b3 = _linear_init(k3, hidden_size, action_size)
    return {"w1": w1, "b1": b1, "w2": w2, "b2": b2, "w3": w3, "b3": b3}


def pack_params(params, lane=128):
    """Zero-pad hidden/action dims to lane multiples once, ahead of time.

    Zero-padded hidden units have zero weight and zero bias, so after ReLU
    they contribute exactly zero downstream; padded output columns are
    sliced away in the wrapper. Numerics are unchanged.
    """
    H = params["w1"].shape[1]
    A = params["w3"].shape[1]
    Hp = _round_up(H, lane)
    Ap = _round_up(A, lane)

    def pad(x, rows, cols):
        return jnp.pad(x, ((0, rows - x.shape[0]), (0, cols - x.shape[1])))

    S = params["w1"].shape[0]
    return {
        "w1": pad(params["w1"], S, Hp),
        "b1": pad(params["b1"], 1, Hp),
        "w2": pad(params["w2"], Hp, Hp),
        "b2": pad(params["b2"], 1, Hp),
        "w3": pad(params["w3"], Hp, Ap),
        "b3": pad(params["b3"], 1, Ap),
    }


def _reference_forward(state, p):
    h1 = jnp.maximum(state @ p["w1"] + p["b1"], 0.0)
    h2 = jnp.maximum(h1 @ p["w2"] + p["b2"], 0.0)
    return h2 @ p["w3"] + p["b3"]


if __name__ == "__main__":
    state_size, action_size, hidden_size = 16, 4, 32
    batch = 2

    key = jax.random.PRNGKey(0)
    k_state, k_params = jax.random.split(key)
    state = jax.random.normal(k_state, (batch, state_size), jnp.float32)

    params = init_params(k_params, state_size, action_size, hidden_size)
    packed = pack_params(params)

    q = dqn_forward(state, packed, action_dim=action_size)
    jax.block_until_ready(q)

    q_ref = _reference_forward(state, params)
    assert q.shape == (batch, action_size), q.shape
    assert jnp.allclose(q, q_ref, atol=1e-5, rtol=1e-5), \
        f"max err {jnp.max(jnp.abs(q - q_ref))}"

    # Also exercise a larger, multi-tile batch to validate the grid path.
    big_state = jax.random.normal(jax.random.PRNGKey(1), (300, state_size), jnp.float32)
    q_big = dqn_forward(big_state, packed, action_dim=action_size)
    jax.block_until_ready(q_big)
    q_big_ref = _reference_forward(big_state, params)
    assert q_big.shape == (300, action_size)
    assert jnp.allclose(q_big, q_big_ref, atol=1e-4, rtol=1e-5)

    print("KERNEL_OK")
</pallas_src>

<mosaic_0001>
module attributes {stable_mosaic.version = 11 : i64} {
  func.func @_dqn_kernel(%arg0: i32, %arg1: memref<8x16xf32, #tpu.memory_space<vmem>>, %arg2: memref<16x128xf32, #tpu.memory_space<vmem>>, %arg3: memref<1x128xf32, #tpu.memory_space<vmem>>, %arg4: memref<128x128xf32, #tpu.memory_space<vmem>>, %arg5: memref<1x128xf32, #tpu.memory_space<vmem>>, %arg6: memref<128x128xf32, #tpu.memory_space<vmem>>, %arg7: memref<1x128xf32, #tpu.memory_space<vmem>>, %arg8: memref<8x128xf32, #tpu.memory_space<vmem>>) attributes {dimension_semantics = [#tpu.dimension_semantics<parallel>], iteration_bounds = array<i64: 1>, scalar_prefetch = 0 : i64, scratch_operands = 0 : i64, tpu.core_type = #tpu.core_type<tc>, window_params = [{transform_indices = @transform_0, window_bounds = array<i64: 8, 16>}, {pipeline_mode = #tpu.pipeline_mode<synchronous>, transform_indices = @transform_1, window_bounds = array<i64: 16, 128>}, {pipeline_mode = #tpu.pipeline_mode<synchronous>, transform_indices = @transform_2, window_bounds = array<i64: 1, 128>}, {pipeline_mode = #tpu.pipeline_mode<synchronous>, transform_indices = @transform_3, window_bounds = array<i64: 128, 128>}, {pipeline_mode = #tpu.pipeline_mode<synchronous>, transform_indices = @transform_4, window_bounds = array<i64: 1, 128>}, {pipeline_mode = #tpu.pipeline_mode<synchronous>, transform_indices = @transform_5, window_bounds = array<i64: 128, 128>}, {pipeline_mode = #tpu.pipeline_mode<synchronous>, transform_indices = @transform_6, window_bounds = array<i64: 1, 128>}, {transform_indices = @transform_7, window_bounds = array<i64: 8, 128>}]} {
    %c0 = arith.constant 0 : index
    %c0_0 = arith.constant 0 : index
    %0 = vector.load %arg1[%c0, %c0_0] : memref<8x16xf32, #tpu.memory_space<vmem>>, vector<8x16xf32>
    %c0_1 = arith.constant 0 : index
    %c0_2 = arith.constant 0 : index
    %1 = vector.load %arg2[%c0_1, %c0_2] : memref<16x128xf32, #tpu.memory_space<vmem>>, vector<16x128xf32>
    %cst = arith.constant dense<0.000000e+00> : vector<8x128xf32>
    %2 = tpu.matmul %0, %1, %cst {dimension_numbers = #tpu.dot_dimension_numbers<[1], [0], [0], [1], [0, 0, 1, 1], [], []>} : vector<8x16xf32>, vector<16x128xf32>, vector<8x128xf32> -> vector<8x128xf32>
    %c0_3 = arith.constant 0 : index
    %c0_4 = arith.constant 0 : index
    %3 = vector.load %arg3[%c0_3, %c0_4] : memref<1x128xf32, #tpu.memory_space<vmem>>, vector<1x128xf32>
    %4 = vector.broadcast %3 : vector<1x128xf32> to vector<8x128xf32>
    %5 = arith.addf %2, %4 : vector<8x128xf32>
    %cst_5 = arith.constant 0.000000e+00 : f32
    %6 = vector.broadcast %cst_5 : f32 to vector<8x128xf32>
    %7 = arith.maximumf %5, %6 : vector<8x128xf32>
    %c0_6 = arith.constant 0 : index
    %c0_7 = arith.constant 0 : index
    %8 = vector.load %arg4[%c0_6, %c0_7] : memref<128x128xf32, #tpu.memory_space<vmem>>, vector<128x128xf32>
    %cst_8 = arith.constant dense<0.000000e+00> : vector<8x128xf32>
    %9 = tpu.matmul %7, %8, %cst_8 {dimension_numbers = #tpu.dot_dimension_numbers<[1], [0], [0], [1], [0, 0, 1, 1], [], []>} : vector<8x128xf32>, vector<128x128xf32>, vector<8x128xf32> -> vector<8x128xf32>
    %c0_9 = arith.constant 0 : index
    %c0_10 = arith.constant 0 : index
    %10 = vector.load %arg5[%c0_9, %c0_10] : memref<1x128xf32, #tpu.memory_space<vmem>>, vector<1x128xf32>
    %11 = vector.broadcast %10 : vector<1x128xf32> to vector<8x128xf32>
    %12 = arith.addf %9, %11 : vector<8x128xf32>
    %cst_11 = arith.constant 0.000000e+00 : f32
    %13 = vector.broadcast %cst_11 : f32 to vector<8x128xf32>
    %14 = arith.maximumf %12, %13 : vector<8x128xf32>
    %c0_12 = arith.constant 0 : index
    %c0_13 = arith.constant 0 : index
    %15 = vector.load %arg6[%c0_12, %c0_13] : memref<128x128xf32, #tpu.memory_space<vmem>>, vector<128x128xf32>
    %cst_14 = arith.constant dense<0.000000e+00> : vector<8x128xf32>
    %16 = tpu.matmul %14, %15, %cst_14 {dimension_numbers = #tpu.dot_dimension_numbers<[1], [0], [0], [1], [0, 0, 1, 1], [], []>} : vector<8x128xf32>, vector<128x128xf32>, vector<8x128xf32> -> vector<8x128xf32>
    %c0_15 = arith.constant 0 : index
    %c0_16 = arith.constant 0 : index
    %17 = vector.load %arg7[%c0_15, %c0_16] : memref<1x128xf32, #tpu.memory_space<vmem>>, vector<1x128xf32>
    %18 = vector.broadcast %17 : vector<1x128xf32> to vector<8x128xf32>
    %19 = arith.addf %16, %18 : vector<8x128xf32>
    %c0_17 = arith.constant 0 : index
    %c0_18 = arith.constant 0 : index
    %20 = vector.load %arg8[%c0_17, %c0_18] : memref<8x128xf32, #tpu.memory_space<vmem>>, vector<8x128xf32>
    tpu.vector_store %arg8[%c0_17, %c0_18], %19 {strides = array<i32>} : memref<8x128xf32, #tpu.memory_space<vmem>>, vector<8x128xf32>,
    return
  }
  func.func @transform_0(%arg0: i32) -> (i32, i32) {
    %c0_i32 = arith.constant 0 : i32
    %c0_i32_0 = arith.constant 0 : i32
    return %arg0, %c0_i32 : i32, i32
  }
  func.func @transform_1(%arg0: i32) -> (i32, i32) {
    %c0_i32 = arith.constant 0 : i32
    %c0_i32_0 = arith.constant 0 : i32
    %c0_i32_1 = arith.constant 0 : i32
    return %c0_i32, %c0_i32_0 : i32, i32
  }
  func.func @transform_2(%arg0: i32) -> (i32, i32) {
    %c0_i32 = arith.constant 0 : i32
    %c0_i32_0 = arith.constant 0 : i32
    %c0_i32_1 = arith.constant 0 : i32
    return %c0_i32, %c0_i32_0 : i32, i32
  }
  func.func @transform_3(%arg0: i32) -> (i32, i32) {
    %c0_i32 = arith.constant 0 : i32
    %c0_i32_0 = arith.constant 0 : i32
    %c0_i32_1 = arith.constant 0 : i32
    return %c0_i32, %c0_i32_0 : i32, i32
  }
  func.func @transform_4(%arg0: i32) -> (i32, i32) {
    %c0_i32 = arith.constant 0 : i32
    %c0_i32_0 = arith.constant 0 : i32
    %c0_i32_1 = arith.constant 0 : i32
    return %c0_i32, %c0_i32_0 : i32, i32
  }
  func.func @transform_5(%arg0: i32) -> (i32, i32) {
    %c0_i32 = arith.constant 0 : i32
    %c0_i32_0 = arith.constant 0 : i32
    %c0_i32_1 = arith.constant 0 : i32
    return %c0_i32, %c0_i32_0 : i32, i32
  }
  func.func @transform_6(%arg0: i32) -> (i32, i32) {
    %c0_i32 = arith.constant 0 : i32
    %c0_i32_0 = arith.constant 0 : i32
    %c0_i32_1 = arith.constant 0 : i32
    return %c0_i32, %c0_i32_0 : i32, i32
  }
  func.func @transform_7(%arg0: i32) -> (i32, i32) {
    %c0_i32 = arith.constant 0 : i32
    %c0_i32_0 = arith.constant 0 : i32
    return %arg0, %c0_i32 : i32, i32
  }
}

</mosaic_0001>

<bundles_post_ra>
// kernel: dqn_forward.1
= control target key start
LH: loop header
LB: loop body
LE: loop exit
PB: predicated region body
PF: predicated region fallthrough
CT: control target
= control target key end

     0   :  { %12 = vsyncpa [#allocation3], 0  ;;  %s669_s0 = inlined_call_operand.vmem [shape: f32[8,16], index: 0, kind: input, shape index: {}]   ;;  %s670_s1 = inlined_call_operand.vmem [shape: f32[16,128], index: 1, kind: input, shape index: {}]   ;;  %s671_s2 = inlined_call_operand.vmem [shape: f32[1,128], index: 2, kind: input, shape index: {}]   ;;  %s672_s3 = inlined_call_operand.hbm [shape: f32[128,128], index: 3, kind: input, shape index: {}]   ;;  %s673_s4 = inlined_call_operand.vmem [shape: f32[1,128], index: 4, kind: input, shape index: {}]   ;;  %s674_s5 = inlined_call_operand.hbm [shape: f32[128,128], index: 5, kind: input, shape index: {}]   ;;  %s675_s6 = inlined_call_operand.vmem [shape: f32[1,128], index: 6, kind: input, shape index: {}]   ;;  %s676_s7 = inlined_call_operand.vmem [shape: f32[8,128], index: 7, kind: output, shape index: {}]  }
   0x1   :  { %13 = vsyncpa [#allocation5], 0  ;;  %s557_s24 = smov [#allocation2]   ;;  %s509_s28 = scalar_lea.hbm %s672_s3, 2048 }
   0x2   :  { %s25_s25 = sshll.u32 %s557_s24, 4  ;;  %p510_p0 = scmp.ne.s32.totalorder %s672_s3, %s509_s28  ;;  %s26_s25 = int_to_ptr.vmem [resolvable:$true] %s25_s25 }
   0x3   :  { %p513_p1 = scmp.lt.u32.totalorder %s509_s28, %s672_s3 }
   0x5   :  { %p515_p2 = pnand %p513_p1, %p510_p0 }
   0x7   :  { %518 = shalt.err (!%p515_p2)
}
   0x8   :  { %s519_s10 = scalar_lea.vmem %s26_s25, 2048  ;;  %p524_p4 = scmp.lt.s32.totalorder %s26_s25, %s26_s25 }
   0x9   :  { %p520_p3 = scmp.ne.s32.totalorder %s26_s25, %s519_s10  ;;  %p525_p5 = scmp.lt.s32.totalorder %s519_s10, %s519_s10 }
   0xb   :  { %p526_p6 = por %p525_p5, %p524_p4 }
   0xd   :  { %p527_p7 = pnand %p526_p6, %p520_p3 }
   0xf   :  { %530 = shalt.err (!%p527_p7)
}
  0x10   :  { %s558_s11 = smov 128   ;;  %s559_s12 = smov 8  }
  0x11   :  { %31 = dma.hbm_to_vmem [thread:$0]  %s672_s3, 2048, %s26_s25, [#allocation3], %s558_s11, %s558_s11, %s559_s12  }
  0x12   :  { %s560_s15 = smov [#allocation4]   ;;  %s531_s19 = scalar_lea.hbm %s674_s5, 2048 }
  0x13   :  { %s39_s16 = sshll.u32 %s560_s15, 4  ;;  %p532_p8 = scmp.ne.s32.totalorder %s674_s5, %s531_s19  ;;  %s40_s16 = int_to_ptr.vmem [resolvable:$true] %s39_s16 }
  0x14   :  { %p535_p9 = scmp.lt.u32.totalorder %s531_s19, %s674_s5 }
  0x16   :  { %p537_p10 = pnand %p535_p9, %p532_p8 }
  0x18   :  { %540 = shalt.err (!%p537_p10)
}
  0x19   :  { %s541_s24 = scalar_lea.vmem %s40_s16, 2048  ;;  %p546_p12 = scmp.lt.s32.totalorder %s40_s16, %s40_s16 }
  0x1a   :  { %p542_p11 = scmp.ne.s32.totalorder %s40_s16, %s541_s24  ;;  %p547_p13 = scmp.lt.s32.totalorder %s541_s24, %s541_s24 }
  0x1c   :  { %p548_p0 = por %p547_p13, %p546_p12 }
  0x1e   :  { %p549_p1 = pnand %p548_p0, %p542_p11 }
  0x20   :  { %552 = shalt.err (!%p549_p1)
}
  0x21   :  { %45 = dma.hbm_to_vmem [thread:$0]  %s674_s5, 2048, %s40_s16, [#allocation5], %s558_s11, %s558_s11, %s559_s12  }
  0x22   :  { %553 = dma.done.wait [#allocation3], 2048  }
  0x23   :  { %554 = vsyncadd [#allocation3], 4294965248 }
  0x24   :  { %555 = dma.done.wait [#allocation5], 2048  }
  0x25   :  { %556 = vsyncadd [#allocation5], 4294965248  ;;  %v561_v0 = vmov 0.0|0.0   ;;  %vm562_vm0 = vmmov 0   ;;  %v563_v1 = vmov 0.0   ;;  %v55_v2 = vld [vmem:[%s670_s1] sm:$0xff] }
  0x26   :  { %451 = vmatprep.subr.bf16.mxu0 %v561_v0  ;;  %378 = vmatprep.mubr.msk.f32.mxu0 %vm562_vm0, %v563_v1  ;;  %v56_v3 = vld [vmem:[%s670_s1 + $0x8] sm:$0xff]  ;;  %v139_v5 = vld [vmem:[#allocation2] sm:$0xff]  ;;  %v140_v6 = vld [vmem:[#allocation2 + $0x8] sm:$0xff]  ;;  %vm64_vm1 = vcmask 130048  }
  0x27   :  { %454 = vmatprep.subr.bf16.mxu1 %v561_v0  ;;  %413 = vmatprep.mubr.msk.f32.mxu1 %vm562_vm0, %v563_v1  ;;  %v452_v4 = vpack.c.bf16 %v56_v3, %v55_v2  ;;  %v141_v7 = vld [vmem:[#allocation2 + $0x10] sm:$0xff]  ;;  %v455_v8 = vpack.c.bf16 %v140_v6, %v139_v5  ;;  %v142_v9 = vld [vmem:[#allocation2 + $0x18] sm:$0xff]  ;;  %v143_v12 = vld [vmem:[#allocation2 + $0x20] sm:$0xff] }
  0x28   :  { %v54_v10 = vld [vmem:[%s669_s0] sm:$0xff]  ;;  %v458_v11 = vpack.c.bf16 %v142_v9, %v141_v7  ;;  %v144_v13 = vld [vmem:[#allocation2 + $0x28] sm:$0xff]  ;;  %v146_v16 = vld [vmem:[#allocation2 + $0x38] sm:$0xff] }
  0x29   :  { %453 = vmatpush3.bf16.msra.mxu0 %v452_v4  ;;  %456 = vmatpush3.bf16.msra.mxu1 %v455_v8  ;;  %v461_v14 = vpack.c.bf16 %v144_v13, %v143_v12  ;;  %v145_v15 = vld [vmem:[#allocation2 + $0x30] sm:$0xff]  ;;  %v147_v18 = vld [vmem:[#allocation2 + $0x40] sm:$0xff]  ;;  %v148_v19 = vld [vmem:[#allocation2 + $0x48] sm:$0xff] }
  0x2a   :  { %478 = vmatprep.subr.bf16.mxu0 %v561_v0  ;;  %457 = vmatprep.subr.bf16.mxu1 %v561_v0  ;;  %v464_v17 = vpack.c.bf16 %v146_v16, %v145_v15  ;;  %v467_v20 = vpack.c.bf16 %v148_v19, %v147_v18  ;;  %v149_v21 = vld [vmem:[#allocation2 + $0x50] sm:$0xff]  ;;  %v150_v22 = vld [vmem:[#allocation2 + $0x58] sm:$0xff]  ;;  %v151_v24 = vld [vmem:[#allocation2 + $0x60] sm:$0xff] }
  0x2b   :  { %v470_v23 = vpack.c.bf16 %v150_v22, %v149_v21  ;;  %v152_v25 = vld [vmem:[#allocation2 + $0x68] sm:$0xff]  ;;  %v153_v27 = vld [vmem:[#allocation2 + $0x70] sm:$0xff]  ;;  %v154_v28 = vld [vmem:[#allocation2 + $0x78] sm:$0xff] }
  0x2c   :  { %379 = vmatmul.mubr.msk.f32.vlgmr.msra.gmra.mrb[0].mxu0 %vm64_vm1, %v54_v10  ;;  %v473_v26 = vpack.c.bf16 %v152_v25, %v151_v24  ;;  %v476_v29 = vpack.c.bf16 %v154_v28, %v153_v27  ;;  %v233_v30 = vld [vmem:[#allocation4] sm:$0xff]  ;;  %v234_v31 = vld [vmem:[#allocation4 + $0x8] sm:$0xff]  ;;  %v235_v32 = vld [vmem:[#allocation4 + $0x10] sm:$0xff] }
  0x2d   :  { %448 = vmatprep.mubr.msk.f32.mxu0 %vm562_vm0, %v563_v1  ;;  %459 = vmatpush3.bf16.msra.mxu1 %v458_v11  ;;  %v479_v33 = vpack.c.bf16 %v234_v31, %v233_v30  ;;  %v236_v34 = vld [vmem:[#allocation4 + $0x18] sm:$0xff]  ;;  %v237_v36 = vld [vmem:[#allocation4 + $0x20] sm:$0xff]  ;;  %v238_v37 = vld [vmem:[#allocation4 + $0x28] sm:$0xff] }
  0x2e   :  { %460 = vmatprep.subr.bf16.mxu1 %v561_v0  ;;  %v482_v35 = vpack.c.bf16 %v236_v34, %v235_v32  ;;  %v485_v38 = vpack.c.bf16 %v238_v37, %v237_v36  ;;  %v239_v39 = vld [vmem:[#allocation4 + $0x30] sm:$0xff]  ;;  %v240_v40 = vld [vmem:[#allocation4 + $0x38] sm:$0xff]  ;;  %v241_v42 = vld [vmem:[#allocation4 + $0x40] sm:$0xff] }
  0x2f   :  { %480 = vmatpush3.bf16.msra.mxu0 %v479_v33  ;;  %v488_v41 = vpack.c.bf16 %v240_v40, %v239_v39  ;;  %v242_v43 = vld [vmem:[#allocation4 + $0x48] sm:$0xff]  ;;  %v243_v45 = vld [vmem:[#allocation4 + $0x50] sm:$0xff]  ;;  %v244_v46 = vld [vmem:[#allocation4 + $0x58] sm:$0xff] }
  0x30   :  { %481 = vmatprep.subr.bf16.mxu0 %v561_v0  ;;  %v491_v44 = vpack.c.bf16 %v242_v43, %v241_v42  ;;  %v494_v47 = vpack.c.bf16 %v244_v46, %v243_v45  ;;  %v245_v48 = vld [vmem:[#allocation4 + $0x60] sm:$0xff]  ;;  %v246_v49 = vld [vmem:[#allocation4 + $0x68] sm:$0xff]  ;;  %v333_v51 = vld [vmem:[%s671_s2] ss:$0 sm:$0xff] }
  0x31   :  { %462 = vmatpush3.bf16.msra.mxu1 %v461_v14  ;;  %v497_v50 = vpack.c.bf16 %v246_v49, %v245_v48  ;;  %v247_v56 = vld [vmem:[#allocation4 + $0x70] sm:$0xff]  ;;  %v248_v57 = vld [vmem:[#allocation4 + $0x78] sm:$0xff] }
  0x32   :  { %463 = vmatprep.subr.bf16.mxu1 %v561_v0  ;;  %v500_v58 = vpack.c.bf16 %v248_v57, %v247_v56  ;;  %v335_v59 = vld [vmem:[%s673_s4] ss:$0 sm:$0xff] }
  0x33   :  { %483 = vmatpush3.bf16.msra.mxu0 %v482_v35 }
  0x34   :  { %484 = vmatprep.subr.bf16.mxu0 %v561_v0 }
  0x35   :  { %465 = vmatpush3.bf16.msra.mxu1 %v464_v17 }
  0x36   :  { %466 = vmatprep.subr.bf16.mxu1 %v561_v0 }
  0x37   :  { %486 = vmatpush3.bf16.msra.mxu0 %v485_v38 }
  0x38   :  { %487 = vmatprep.subr.bf16.mxu0 %v561_v0 }
  0x39   :  { %468 = vmatpush3.bf16.msra.mxu1 %v467_v20 }
  0x3a   :  { %469 = vmatprep.subr.bf16.mxu1 %v561_v0 }
  0x3b   :  { %489 = vmatpush3.bf16.msra.mxu0 %v488_v41 }
  0x3c   :  { %490 = vmatprep.subr.bf16.mxu0 %v561_v0 }
  0x3d   :  { %471 = vmatpush3.bf16.msra.mxu1 %v470_v23 }
  0x3e   :  { %472 = vmatprep.subr.bf16.mxu1 %v561_v0 }
  0x3f   :  { %492 = vmatpush3.bf16.msra.mxu0 %v491_v44 }
  0x40   :  { %493 = vmatprep.subr.bf16.mxu0 %v561_v0 }
  0x41   :  { %474 = vmatpush3.bf16.msra.mxu1 %v473_v26 }
  0x42   :  { %475 = vmatprep.subr.bf16.mxu1 %v561_v0 }
  0x43   :  { %495 = vmatpush3.bf16.msra.mxu0 %v494_v47 }
  0x44   :  { %496 = vmatprep.subr.bf16.mxu0 %v561_v0 }
  0x45   :  { %477 = vmatpush3.bf16.msra.mxu1 %v476_v29 }
  0x47   :  { %498 = vmatpush3.bf16.msra.mxu0 %v497_v50 }
  0x48   :  { %499 = vmatprep.subr.bf16.mxu0 %v561_v0  ;;  %v336_v0 = vld [vmem:[%s675_s6] ss:$0 sm:$0xff] }
  0x4b   :  { %501 = vmatpush3.bf16.msra.mxu0 %v500_v58 }
  0xff   :  { %v134_v52 = vpop.f32.mrb[0].mxu0 }
 0x100   :  { %v135_v53 = vadd.f32 %v333_v51, %v134_v52  ;;  %v380_v54 = vpop.f32.mrb[1].mxu0 }
 0x102   :  { %v138_v55 = vmax.f32 %v135_v53, 0.0 }
 0x104   :  { %414 = vmatmul.mubr.f32.vlgmr.msra.gmra.mrb[0].mxu1 %v138_v55 }
 0x1d7   :  { %v228_v60 = vpop.f32.mrb[0].mxu1 }
 0x1d8   :  { %v229_v61 = vadd.f32 %v335_v59, %v228_v60  ;;  %v415_v62 = vpop.f32.mrb[1].mxu1 }
 0x1da   :  { %v232_v63 = vmax.f32 %v229_v61, 0.0 }
 0x1dc   :  { %449 = vmatmul.mubr.f32.vlgmr.msra.gmra.mrb[2].mxu0 %v232_v63 }
 0x2af   :  { %v322_v1 = vpop.f32.mrb[2].mxu0 }
 0x2b0   :  { %v323_v2 = vadd.f32 %v336_v0, %v322_v1  ;;  %v450_v3 = vpop.f32.mrb[3].mxu0 }
 0x2b2   :  { %326 = vst [vmem:[%s676_s7] sm:$0xff] %v323_v2 }
 0x2b3   :  { %331 = vsyncpa [#allocation3], 1 }
 0x2b4   :  { %332 = vsyncpa [#allocation5], 1 }

</bundles_post_ra>
